<compile_context>
chip_gen: v7x
topology: tpu7x:2x2x1
jax: 0.10.0
libtpu: 0.0.40
codegen_flags: <defaults>
</compile_context>

<pallas_src>
import math

import jax
import jax.numpy as jnp
from jax.experimental import pallas as pl
from jax.experimental.pallas import tpu as pltpu

_LANE = 128
_SUBLANE = 8
_BLOCK_BUDGET_BYTES = 12 * 1024 * 1024   # per pipelined input block
_VMEM_LIMIT_BYTES = 40 * 1024 * 1024     # 2 x 12 MiB buffers + headroom, < v7x VMEM


def _make_count_kernel(threshold, num_rows, tile_r, grid_inner):
    """Counts elements < threshold into a lane-dense (1, 8, 128) int32 block."""
    vregs = tile_r // _SUBLANE

    def kernel(d_ref, out_ref):
        p = pl.program_id(0)   # megacore slice
        j = pl.program_id(1)   # reduction step within the slice

        @pl.when(j == 0)
        def _init():
            out_ref[...] = jnp.zeros_like(out_ref)

        d = d_ref[...]                                  # (tile_r, 128), native dtype
        thr = jnp.asarray(threshold, dtype=d.dtype)
        ones = (d < thr).astype(jnp.int32)              # VPU compare, no upcast of data

        g = p * grid_inner + j                          # logical global tile index
        row_start = g * tile_r

        def fold(x):
            # (tile_r, 128) -> (vregs, 8, 128) groups whole vregs (free reshape,
            # does not cross the (8,128) tile boundary); summing the vreg axis
            # is pure VALU adds -> one (8, 128) partial per step.
            return jnp.sum(x.reshape(vregs, _SUBLANE, _LANE), axis=0)

        # Fast path: tile fully in range -- no iota / select at all.
        @pl.when(row_start + tile_r <= num_rows)
        def _full_tile():
            out_ref[...] += fold(ones)[None]

        # Slow path: only the last (partial) tile and any padded-grid tiles.
        @pl.when(row_start + tile_r > num_rows)
        def _partial_tile():
            row = jax.lax.broadcasted_iota(jnp.int32, ones.shape, 0)
            masked = jnp.where(row_start + row < num_rows, ones, 0)
            out_ref[...] += fold(masked)[None]

    return kernel


def distance_accuracy(distance: jax.Array, threshold: float = 0.05) -> jax.Array:
    """Pallas implementation of DistanceAccuracy.forward."""
    shape = distance.shape
    B = int(shape[0])
    total = int(math.prod(shape[1:]))
    n_elems = B * total

    # Flatten everything: only the global count matters (see header identity).
    flat = distance.reshape(-1)                         # free contiguous view
    rem = n_elems % _LANE
    if rem:
        # Pad with the threshold value (never satisfies strict '<').
        # TODO(synk): replace this pad (a full HBM copy on the unaligned path)
        # with in-kernel lane masking of the final partial row.
        flat = jnp.pad(flat, (0, _LANE - rem), constant_values=float(threshold))
    num_rows = flat.shape[0] // _LANE
    d2 = flat.reshape(num_rows, _LANE)                  # free reshape

    itemsize = jnp.dtype(distance.dtype).itemsize
    sub = max(_SUBLANE, 32 // itemsize)                 # 8 f32 / 16 bf16 / 32 int8
    cap_r = max(sub, (_BLOCK_BUDGET_BYTES // (_LANE * itemsize)) // sub * sub)
    # Aim for >= 4 global row tiles so each core keeps >= 2 pipelined steps.
    want_r = -(-num_rows // 4)
    want_r = max(sub, -(-want_r // sub) * sub)
    tile_r = min(cap_r, want_r)

    grid_r = -(-num_rows // tile_r)
    num_par = 2 if grid_r >= 2 else 1                   # 2-way megacore split (v7x)
    grid_inner = -(-grid_r // num_par)
    last_block = grid_r - 1                             # clamp for the padded grid

    kernel = _make_count_kernel(threshold, num_rows, tile_r, grid_inner)

    counts = pl.pallas_call(
        kernel,
        out_shape=jax.ShapeDtypeStruct((num_par, _SUBLANE, _LANE), jnp.int32),
        grid_spec=pltpu.PrefetchScalarGridSpec(
            num_scalar_prefetch=0,
            grid=(num_par, grid_inner),
            in_specs=[
                pl.BlockSpec(
                    (tile_r, _LANE),
                    lambda p, j: (jnp.minimum(p * grid_inner + j, last_block), 0),
                ),
            ],
            out_specs=pl.BlockSpec((1, _SUBLANE, _LANE), lambda p, j: (p, 0, 0)),
        ),
        compiler_params=pltpu.CompilerParams(
            dimension_semantics=("parallel", "arbitrary"),
            vmem_limit_bytes=_VMEM_LIMIT_BYTES,
        ),
        cost_estimate=pl.CostEstimate(
            flops=2 * num_rows * _LANE,
            transcendentals=0,
            bytes_accessed=num_rows * _LANE * itemsize
            + num_par * _SUBLANE * _LANE * 4,
        ),
    )(d2)

    # Tiny epilogue: one cross-lane reduce + the global fraction.
    count = jnp.sum(counts).astype(jnp.float32)
    return count / jnp.float32(n_elems)


if __name__ == "__main__":
    key = jax.random.PRNGKey(0)
    # Small shape consistent with a per-element "distance" tensor.
    x = jax.random.uniform(key, (2, 4, 16, 16), dtype=jnp.float32) * 0.1

    out = distance_accuracy(x, threshold=0.05)
    out = jax.block_until_ready(out)

    # Pure-JAX reference check (matches the PyTorch module).
    total = 4 * 16 * 16
    ref = jnp.mean(
        jnp.sum((x.reshape(2, -1) < 0.05).astype(jnp.float32), axis=1) / total
    )
    assert jnp.allclose(out, ref, atol=1e-6), (out, ref)

    print("KERNEL_OK")
</pallas_src>

<mosaic_0001>
module attributes {stable_mosaic.version = 11 : i64} {
  func.func @kernel(%arg0: i32, %arg1: i32, %arg2: memref<8x128xf32, #tpu.memory_space<vmem>>, %arg3: memref<1x8x128xi32, #tpu.memory_space<vmem>>) attributes {dimension_semantics = [#tpu.dimension_semantics<parallel>, #tpu.dimension_semantics<arbitrary>], iteration_bounds = array<i64: 2, 1>, scalar_prefetch = 0 : i64, scratch_operands = 0 : i64, tpu.core_type = #tpu.core_type<tc>, window_params = [{transform_indices = @transform_0, window_bounds = array<i64: 8, 128>}, {transform_indices = @transform_1, window_bounds = array<i64: 1, 8, 128>}]} {
    %c0_i32 = arith.constant 0 : i32
    %0 = arith.cmpi eq, %arg1, %c0_i32 : i32
    %1 = arith.extui %0 : i1 to i32
    %c0_i32_0 = arith.constant 0 : i32
    %2 = arith.cmpi ne, %1, %c0_i32_0 : i32
    scf.if %2 {
      %c0_i32_7 = arith.constant 0 : i32
      %18 = vector.broadcast %c0_i32_7 : i32 to vector<1x8x128xi32>
      %c0_8 = arith.constant 0 : index
      %c0_9 = arith.constant 0 : index
      %c0_10 = arith.constant 0 : index
      %19 = vector.load %arg3[%c0_8, %c0_9, %c0_10] : memref<1x8x128xi32, #tpu.memory_space<vmem>>, vector<1x8x128xi32>
      tpu.vector_store %arg3[%c0_8, %c0_9, %c0_10], %18 {strides = array<i32>} : memref<1x8x128xi32, #tpu.memory_space<vmem>>, vector<1x8x128xi32>,
    } else {
    }
    %c0 = arith.constant 0 : index
    %c0_1 = arith.constant 0 : index
    %3 = vector.load %arg2[%c0, %c0_1] : memref<8x128xf32, #tpu.memory_space<vmem>>, vector<8x128xf32>
    %cst = arith.constant 5.000000e-02 : f32
    %4 = vector.broadcast %cst : f32 to vector<8x128xf32>
    %5 = arith.cmpf olt, %3, %4 : vector<8x128xf32>
    %6 = arith.extui %5 : vector<8x128xi1> to vector<8x128xi32>
    %c1_i32 = arith.constant 1 : i32
    %7 = arith.muli %arg0, %c1_i32 : i32
    %8 = arith.addi %7, %arg1 : i32
    %c8_i32 = arith.constant 8 : i32
    %9 = arith.muli %8, %c8_i32 : i32
    %c8_i32_2 = arith.constant 8 : i32
    %10 = arith.addi %9, %c8_i32_2 : i32
    %c16_i32 = arith.constant 16 : i32
    %11 = arith.cmpi sle, %10, %c16_i32 : i32
    %12 = arith.extui %11 : i1 to i32
    %c0_i32_3 = arith.constant 0 : i32
    %13 = arith.cmpi ne, %12, %c0_i32_3 : i32
    scf.if %13 {
      %c0_7 = arith.constant 0 : index
      %c0_8 = arith.constant 0 : index
      %c0_9 = arith.constant 0 : index
      %18 = vector.load %arg3[%c0_7, %c0_8, %c0_9] : memref<1x8x128xi32, #tpu.memory_space<vmem>>, vector<1x8x128xi32>
      %19 = vector.shape_cast %6 : vector<8x128xi32> to vector<1x8x128xi32>
      %cst_10 = arith.constant dense<0> : vector<8x128xi32>
      %20 = vector.multi_reduction <add>, %19, %cst_10 [0] : vector<1x8x128xi32> to vector<8x128xi32>
      %21 = vector.shape_cast %20 : vector<8x128xi32> to vector<1x8x128xi32>
      %22 = arith.addi %18, %21 : vector<1x8x128xi32>
      %c0_11 = arith.constant 0 : index
      %c0_12 = arith.constant 0 : index
      %c0_13 = arith.constant 0 : index
      %23 = vector.load %arg3[%c0_11, %c0_12, %c0_13] : memref<1x8x128xi32, #tpu.memory_space<vmem>>, vector<1x8x128xi32>
      tpu.vector_store %arg3[%c0_11, %c0_12, %c0_13], %22 {strides = array<i32>} : memref<1x8x128xi32, #tpu.memory_space<vmem>>, vector<1x8x128xi32>,
    } else {
    }
    %c8_i32_4 = arith.constant 8 : i32
    %14 = arith.addi %9, %c8_i32_4 : i32
    %c16_i32_5 = arith.constant 16 : i32
    %15 = arith.cmpi sgt, %14, %c16_i32_5 : i32
    %16 = arith.extui %15 : i1 to i32
    %c0_i32_6 = arith.constant 0 : i32
    %17 = arith.cmpi ne, %16, %c0_i32_6 : i32
    scf.if %17 {
      %18 = tpu.iota {dimensions = array<i32: 0>} : vector<8x128xi32>
      %19 = vector.broadcast %9 : i32 to vector<8x128xi32>
      %20 = arith.addi %19, %18 : vector<8x128xi32>
      %c16_i32_7 = arith.constant 16 : i32
      %21 = vector.broadcast %c16_i32_7 : i32 to vector<8x128xi32>
      %22 = arith.cmpi slt, %20, %21 : vector<8x128xi32>
      %c0_i32_8 = arith.constant 0 : i32
      %23 = vector.broadcast %c0_i32_8 : i32 to vector<8x128xi32>
      %24 = arith.select %22, %6, %23 : vector<8x128xi1>, vector<8x128xi32>
      %c0_9 = arith.constant 0 : index
      %c0_10 = arith.constant 0 : index
      %c0_11 = arith.constant 0 : index
      %25 = vector.load %arg3[%c0_9, %c0_10, %c0_11] : memref<1x8x128xi32, #tpu.memory_space<vmem>>, vector<1x8x128xi32>
      %26 = vector.shape_cast %24 : vector<8x128xi32> to vector<1x8x128xi32>
      %cst_12 = arith.constant dense<0> : vector<8x128xi32>
      %27 = vector.multi_reduction <add>, %26, %cst_12 [0] : vector<1x8x128xi32> to vector<8x128xi32>
      %28 = vector.shape_cast %27 : vector<8x128xi32> to vector<1x8x128xi32>
      %29 = arith.addi %25, %28 : vector<1x8x128xi32>
      %c0_13 = arith.constant 0 : index
      %c0_14 = arith.constant 0 : index
      %c0_15 = arith.constant 0 : index
      %30 = vector.load %arg3[%c0_13, %c0_14, %c0_15] : memref<1x8x128xi32, #tpu.memory_space<vmem>>, vector<1x8x128xi32>
      tpu.vector_store %arg3[%c0_13, %c0_14, %c0_15], %29 {strides = array<i32>} : memref<1x8x128xi32, #tpu.memory_space<vmem>>, vector<1x8x128xi32>,
    } else {
    }
    return
  }
  func.func @transform_0(%arg0: i32, %arg1: i32) -> (i32, i32) {
    %c1_i32 = arith.constant 1 : i32
    %0 = arith.muli %arg0, %c1_i32 : i32
    %1 = arith.addi %0, %arg1 : i32
    %c1_i32_0 = arith.constant 1 : i32
    %2 = arith.minsi %1, %c1_i32_0 : i32
    %c0_i32 = arith.constant 0 : i32
    %c0_i32_1 = arith.constant 0 : i32
    return %2, %c0_i32 : i32, i32
  }
  func.func @transform_1(%arg0: i32, %arg1: i32) -> (i32, i32, i32) {
    %c0_i32 = arith.constant 0 : i32
    %c0_i32_0 = arith.constant 0 : i32
    %c0_i32_1 = arith.constant 0 : i32
    return %arg0, %c0_i32, %c0_i32_0 : i32, i32, i32
  }
}

</mosaic_0001>

<bundles_post_ra>
// kernel: tpu_custom_call.1
= control target key start
LH: loop header
LB: loop body
LE: loop exit
PB: predicated region body
PF: predicated region fallthrough
CT: control target
= control target key end

     0   :  { %6 = vsyncpa [#allocation3], 0  ;;  %s736_s0 = inlined_call_operand.hbm [shape: f32[16,128], index: 0, kind: input, shape index: {}]   ;;  %s737_s1 = inlined_call_operand.hbm [shape: s32[2,8,128], index: 1, kind: output, shape index: {}]  }
   0x1   :  { %8 = vsyncpa [#allocation3 + $0x1], 0 }
   0x2   :  { %9 = vsyncpa [#allocation4], 0 }
   0x3   :  { %11 = vsyncpa [#allocation4 + $0x1], 0  ;;  %s533_s6 = smov 0   ;;  %s535_s7 = smov 0  }
   0x4   :  { %s537_s8 = smov 0   ;;  %s539_s9 = smov 0  }
   0x5   :  { %s541_s10 = smov 0   ;;  %s543_s11 = smov 0  }
   0x6   :  { %s545_s12 = smov 0   ;;  %s547_s13 = smov 0  }
   0x7   :  { %s549_s14 = smov 0  }
   0x8 LB: > { %s279_s15 = sadd.s32 4294967295, %s518_s14   ;;  %s280_s16 = sadd.s32 4294967294, %s518_s14   ;;  %s518_s14 = sphi %s549_s14, %s17_s14   ;;  %s514_s13 = sphi %s547_s13, %s756_s13   ;;  %s510_s12 = sphi %s545_s12, %s755_s12   ;;  %s506_s11 = sphi %s543_s11, %s754_s11   ;;  %s502_s10 = sphi %s541_s10, %s753_s10   ;;  %s498_s9 = sphi %s539_s9, %s752_s9   ;;  %s494_s8 = sphi %s537_s8, %s751_s8   ;;  %s490_s7 = sphi %s535_s7, %s750_s7   ;;  %s486_s6 = sphi %s533_s6, %s749_s6  }
   0x9   : > { %s29_s17 = sadd.s32 1, %s514_s13  ;;  %p34_p0 = scmp.lt.s32.totalorder %s514_s13, 1 }
   0xa   : > { %p31_p1 = scmp.ge.s32.totalorder %s29_s17, 2  ;;  %s42_s18 = sadd.s32 1, %s506_s11 }
   0xb   : > { %s582_s19 = scalar_select %p34_p0, %s514_s13, 1 }
   0xc   : > { %s758_s17 = smov (%p31_p1, %s29_s17), 0  ;;  %p49_p2 = scmp.ne.s32.totalorder %s506_s11, %s502_s10 }
   0xd   : > { %p50_p3 = scmp.eq.s32.totalorder %s518_s14, 0  ;;  %p37_p4 = scmp.lt.s32.totalorder %s758_s17, 1 }
   0xe   : > { %p55_p5 = scmp.ne.s32.totalorder %s502_s10, %s498_s9  ;;  %p56_p7 = scmp.eq.s32.totalorder %s279_s15, 0 }
   0xf   : > { %p591_p6 = por %p50_p3, %p49_p2  ;;  %s65_s23 = ssub.s32 %s514_s13, %s758_s17 }
  0x10   : > { %s38_s21 = scalar_select %p37_p4, %s758_s17, 1 }
  0x11   : > { %p596_p8 = por %p56_p7, %p55_p5  ;;  %p66_p9 = scmp.eq.s32.totalorder %s65_s23, 0 }
  0x12   : > { %s39_s24 = ssub.s32 %s582_s19, %s38_s21  ;;  %s68_s25 = sadd.s32 1, %s494_s8 }
  0x13   : > { %p40_p10 = scmp.eq.s32.totalorder %s39_s24, 0  ;;  %p78_p11 = scmp.ne.s32.totalorder %s494_s8, %s490_s7 }
  0x14   : > { %s605_s26 = scalar_select %p66_p9, %s494_s8, %s68_s25  }
  0x15   : > { %s608_s27 = scalar_select %p40_p10, %s506_s11, %s42_s18  }
  0x16   : > { %p79_p12 = scmp.eq.s32.totalorder %s279_s15, 1  ;;  %p84_p13 = scmp.ne.s32.totalorder %s490_s7, %s486_s6 }
  0x17   : > { %p85_p0 = scmp.eq.s32.totalorder %s280_s16, 1  ;;  %p307_p4 = scmp.lt.s32.totalorder %s518_s14, 2 }
  0x18   : > { %p614_p1 = por %p79_p12, %p78_p11  ;;  %s105_s30 = sand.u32 1, %s506_s11  }
  0x19   : > { %p619_p3 = por %p85_p0, %p84_p13  ;;  %s284_s2 = sshll.u32 %s582_s19, 7 }
  0x1a   : > { %s741_s28 = scalar_select %p614_p1, 1, 0 }
  0x1b   : > { %s742_s29 = scalar_select %p619_p3, 1, 0 }
  0x1c   : > { %s283_s3 = sshll.u32 %s105_s30, 3  ;;  %s629_s9 = scalar_lea.hbm %s736_s0, %s284_s2 }
  0x1d   : > { %s109_s15 = scalar_lea.vmem [#allocation2], %s283_s3  ;;  %p633_p5 = pnand %p307_p4, %p591_p6 }
  0x1e   : > { %s119_s16 = sshll.u32 %s109_s15, 4  ;;  %s106_s19 = scalar_lea.sflag [#allocation3], %s105_s30  ;;  %s637_s16 = int_to_ptr.vmem [resolvable:$true] %s119_s16 }
  0x1f   : > { %s382_s21 = scalar_lea.hbm %s629_s9, 128  ;;  %p384_p11 = pneg %p633_p5 }
  0x20   : > { %p383_p10 = scmp.ne.s32.totalorder %s629_s9, %s382_s21  ;;  %s387_s24 = scalar_lea.hbm %s736_s0, 256 }
  0x21   : > { %p388_p6 = scmp.lt.u32.totalorder %s629_s9, %s736_s0  ;;  %p389_p0 = scmp.lt.u32.totalorder %s387_s24, %s382_s21 }
  0x22   : > { %p385_p12 = pnand %p384_p11, %p383_p10  ;;  %p391_p2 = scmp.lt.u32.totalorder %s382_s21, %s629_s9 }
  0x23   : > { %p390_p4 = por %p389_p0, %p388_p6 }
  0x24   : > { %p386_p13 = pneg %p385_p12 }
  0x25   : > { %p392_p7 = por %p391_p2, %p390_p4 }
  0x27   : > { %p393_p9 = pnand %p392_p7, %p386_p13 }
  0x29   : > { %396 = shalt.err (!%p393_p9)
}
  0x2a   : > { %s397_s30 = scalar_lea.vmem %s637_s16, 128  ;;  %s520_s3 = smov [#allocation2]  }
  0x2b   : > { %p398_p10 = scmp.ne.s32.totalorder %s637_s16, %s397_s30  ;;  %s402_s4 = sshll.u32 %s520_s3, 4  ;;  %s403_s4 = int_to_ptr.vmem [resolvable:$false] %s402_s4 }
  0x2c   : > { %s404_s5 = scalar_lea.vmem %s403_s4, 256  ;;  %p405_p1 = scmp.lt.s32.totalorder %s637_s16, %s403_s4 }
  0x2d   : > { %p400_p12 = pnand %p398_p10, %p384_p11  ;;  %p406_p6 = scmp.lt.s32.totalorder %s404_s5, %s397_s30 }
  0x2f   : > { %p401_p3 = pneg %p400_p12  ;;  %p407_p0 = por %p406_p6, %p405_p1 }
  0x31   : > { %p408_p2 = pnand %p407_p0, %p401_p3 }
  0x33   : > { %411 = shalt.err (!%p408_p2)
}
  0x34   : > { %302 = dma.hbm_to_vmem [thread:$0]  (!%p633_p5), %s629_s9, 128, %s637_s16, %s106_s19  }
  0x35   : > { %p744_p7 = scmp.lt.s32.totalorder %s518_s14, 3  ;;  %p745_p9 = scmp.ge.s32.totalorder %s518_s14, 1 }
  0x37   : > { %p125_p11 = pnand %p745_p9, %p744_p7 }
  0x38   : > { %s130_s15 = sand.u32 (!%p125_p11), 1, %s502_s10  }
  0x39   : > { %128 = sbr.rel (%p125_p11) target bundleno = 116 (0x74), region = 24  ;;  %s286_s21 = sshll.u32 (!%p125_p11), %s130_s15, 3 }
  0x3a   : > { %s131_s20 = scalar_lea.sflag (!%p125_p11), [#allocation3], %s130_s15  ;;  %s134_s23 = scalar_lea.vmem (!%p125_p11), [#allocation2], %s286_s21 }
  0x40   : > { %477 = dma.done.wait (%p596_p8), %s131_s20, 128  }
  0x41   : > { %479 = vsyncadd (%p596_p8), %s131_s20, 4294967168  ;;  %s150_s18 = sand.u32 1, %s490_s7   ;;  %s288_s9 = sshll.u32 %s510_s12, 3  ;;  %v521_v0 = vmov 0   ;;  %v161_v1 = vld [vmem:[%s134_s23] sm:$0xff] }
  0x42   : > { %s287_s16 = sshll.u32 %s150_s18, 3  ;;  %s166_s19 = sadd.s32 8, %s288_s9  ;;  %vm162_vm0 = vcmp.lt.f32.partialorder %v161_v1, 0.05 }
  0x43   : > { %s152_s24 = scalar_lea.vmem [#allocation5], %s287_s16  ;;  %v163_v2 = vsel %vm162_vm0, 1, %v521_v0  ;;  %p289_p1 = scmp.gt.s32.totalorder %s166_s19, 16 }
  0x44   : > { %160 = vst [vmem:[%s152_s24] sm:$0xff] %v521_v0 }
  0x45   : > { %170 = sbr.rel (%p289_p1) target bundleno = 79 (0x4f), region = 36 }
  0x4b   : > { %v171_v3 = vld [vmem:[%s152_s24] sm:$0xff] (!%p289_p1) }
  0x4c   : > { %v172_v4 = vadd.s32 %v171_v3, %v163_v2 }
  0x4e   : > { %173 = vst [vmem:[%s152_s24] sm:$0xff] %v172_v4 }
  0x4f PF: > { %p290_p8 = scmp.le.s32.totalorder %s166_s19, 16 }
  0x50   : > { %v178_v5 = vlaneseq (!%p290_p8)  ;;  %v180_v6 = vstv (!%p290_p8), %s288_s9 }
  0x51   : > { %177 = sbr.rel (%p290_p8) target bundleno = 91 (0x5b), region = 40 }
  0x52   : > { %v179_v7 = vshrl.u32 (!%p290_p8), %v178_v5, 7 }
  0x54   : > { %v181_v8 = vadd.s32 (!%p290_p8), %v180_v6, %v179_v7 }
  0x55   : > { %v184_v9 = vld [vmem:[%s152_s24] sm:$0xff] (!%p290_p8) }
  0x56   : > { %vm182_vm1 = vcmp.lt.s32.totalorder (!%p290_p8), %v181_v8, 16 }
  0x57   : > { %v183_v10 = vsel (!%p290_p8), %vm182_vm1, %v163_v2, 0 }
  0x58   : > { %v185_v11 = vadd.s32 %v184_v9, %v183_v10 }
  0x5a   : > { %186 = vst [vmem:[%s152_s24] sm:$0xff] %v185_v11 }
  0x5b PF: > { %s292_s22 = sshll.u32 %s510_s12, 7  ;;  %s201_s3 = sshll.u32 %s152_s24, 4  ;;  %s202_s3 = int_to_ptr.vmem [resolvable:$true] %s201_s3 }
  0x5c   : > { %s683_s30 = scalar_lea.hbm %s737_s1, %s292_s22  ;;  %s188_s4 = scalar_lea.sflag [#allocation4], %s150_s18 }
  0x5d   : > { %s412_s5 = scalar_lea.vmem %s202_s3, 128  ;;  %p746_p5 = scmp.ne.s32.totalorder %s741_s28, 0 }
  0x5e   : > { %p413_p3 = scmp.ne.s32.totalorder %s202_s3, %s412_s5  ;;  %s522_s15 = smov [#allocation5]  }
  0x5f   : > { %s416_s21 = sshll.u32 %s522_s15, 4  ;;  %s417_s21 = int_to_ptr.vmem [resolvable:$false] %s416_s21 }
  0x60   : > { %p414_p13 = pnand %p413_p3, %p746_p5  ;;  %s418_s20 = scalar_lea.vmem %s417_s21, 256 }
  0x61   : > { %p419_p10 = scmp.lt.s32.totalorder %s202_s3, %s417_s21  ;;  %p420_p12 = scmp.lt.s32.totalorder %s418_s20, %s412_s5 }
  0x62   : > { %p415_p4 = pneg %p414_p13 }
  0x63   : > { %p421_p6 = por %p420_p12, %p419_p10 }
  0x65   : > { %p422_p0 = pnand %p421_p6, %p415_p4 }
  0x67   : > { %425 = shalt.err (!%p422_p0)
}
  0x68   : > { %s426_s12 = scalar_lea.hbm %s683_s30, 128  ;;  %s430_s9 = scalar_lea.hbm %s737_s1, 256 }
  0x69   : > { %p427_p2 = scmp.ne.s32.totalorder %s683_s30, %s426_s12  ;;  %p431_p11 = scmp.lt.u32.totalorder %s683_s30, %s737_s1 }
  0x6a   : > { %p432_p1 = scmp.lt.u32.totalorder %s430_s9, %s426_s12  ;;  %p434_p3 = scmp.lt.u32.totalorder %s426_s12, %s683_s30 }
  0x6b   : > { %p428_p7 = pnand %p427_p2, %p746_p5 }
  0x6c   : > { %p433_p8 = por %p432_p1, %p431_p11 }
  0x6d   : > { %p429_p9 = pneg %p428_p7 }
  0x6e   : > { %p435_p13 = por %p434_p3, %p433_p8 }
  0x70   : > { %p436_p4 = pnand %p435_p13, %p429_p9 }
  0x72   : > { %439 = shalt.err (!%p436_p4)
}
  0x73   : > { %297 = dma.vmem_to_hbm [thread:$0]  (%p746_p5), %s202_s3, 128, %s683_s30, %s188_s4  }
  0x74 PF: > { %s213_s24 = sand.u32 1, %s486_s6   ;;  %p747_p10 = scmp.ne.s32.totalorder %s742_s29, 0 }
  0x75   : > { %p748_p12 = scmp.ge.s32.totalorder %s518_s14, 2  ;;  %s214_s22 = scalar_lea.sflag [#allocation4], %s213_s24 }
  0x77   : > { %p304_p6 = pnand %p748_p12, %p747_p10 }
  0x79   : > { %481 = dma.done.wait (!%p304_p6), %s214_s22, 128  }
  0x7a   : > { %483 = vsyncadd (!%p304_p6), %s214_s22, 4294967168  ;;  %s17_s14 = sadd.s32 1, %s518_s14   ;;  %s749_s6 = smov %s490_s7 }
  0x7b   : > { %p14_p0 = scmp.ge.s32.totalorder %s17_s14, 4   ;;  %s750_s7 = smov %s494_s8 }
  0x7c   : > { %s751_s8 = smov %s605_s26  ;;  %s752_s9 = smov %s502_s10 }
  0x7d   : > { %s753_s10 = smov %s506_s11  ;;  %s754_s11 = smov %s608_s27 }
  0x7e   : > { %s755_s12 = smov %s514_s13  ;;  %s756_s13 = smov %s758_s17 }
  0x7f   :  { %16 = sbr.rel (!%p14_p0) target bundleno = 8 (0x8), region = 81 }
  0x86   :  { %219 = vsyncpa [#allocation3], 1 }
  0x87   :  { %221 = vsyncpa [#allocation3 + $0x1], 1 }
  0x88   :  { %222 = vsyncpa [#allocation4], 1 }
  0x89   :  { %224 = vsyncpa [#allocation4 + $0x1], 1 }

</bundles_post_ra>
